<compile_context>
chip_gen: v7x
topology: tpu7x:2x2x1
jax: 0.10.0
libtpu: 0.0.40
codegen_flags: <defaults>
</compile_context>

<pallas_src>
import functools

import jax
import jax.numpy as jnp
from jax.experimental import pallas as pl
from jax.experimental.pallas import tpu as pltpu


def _residual_block_kernel(seed_ref, x_ref, w1_ref, b1_ref, w2_ref, b2_ref,
                           o_ref, *, training: bool, p: float):
    x = x_ref[...]                                   # f32 [TM, D]

    # fc1 (bf16 MXU inputs, f32 accumulation) + bias + ReLU
    h = jnp.dot(x.astype(jnp.bfloat16), w1_ref[...],
                preferred_element_type=jnp.float32)
    h = jnp.maximum(h + b1_ref[...], 0.0)

    do_dropout = training and p > 0.0
    if do_dropout:
        # Per-tile independent seed: mix the grid index into the base seed.
        pltpu.prng_seed(seed_ref[0] + pl.program_id(0))
        if p >= 1.0:
            # Degenerate case: drop everything (avoid uint32 threshold overflow).
            drop_all = True
        else:
            drop_all = False
            scale = jnp.float32(1.0 / (1.0 - p))
            thresh = jnp.uint32(min(int(p * (2 ** 32)), 2 ** 32 - 1))

    if do_dropout:
        if drop_all:
            h = jnp.zeros_like(h)
        else:
            bits1 = pltpu.bitcast(pltpu.prng_random_bits(h.shape), jnp.uint32)
            h = jnp.where(bits1 >= thresh, h * scale, 0.0)

    # fc2 + bias + ReLU
    y = jnp.dot(h.astype(jnp.bfloat16), w2_ref[...],
                preferred_element_type=jnp.float32)
    y = jnp.maximum(y + b2_ref[...], 0.0)

    if do_dropout:
        if drop_all:
            y = jnp.zeros_like(y)
        else:
            bits2 = pltpu.bitcast(pltpu.prng_random_bits(y.shape), jnp.uint32)
            y = jnp.where(bits2 >= thresh, y * scale, 0.0)

    # residual add (f32) and store
    o_ref[...] = (y + x).astype(o_ref.dtype)


def residual_block(x, w1_t, b1, w2_t, b2, *, training=False, p=0.5, seed=0,
                   tm=256):
    """ResidualBlock forward.

    x:    [B, D] float32
    w*_t: [D, D] (already transposed to in x out), any float dtype
    b*:   [D] or [1, D]
    """
    B, D = x.shape

    # --- batch tiling -------------------------------------------------------
    tm_eff = min(tm, B)
    tm_eff = max(8, -(-tm_eff // 8) * 8)          # sublane-align (multiple of 8)
    b_pad = -(-B // tm_eff) * tm_eff
    x_in = jnp.pad(x, ((0, b_pad - B), (0, 0))) if b_pad != B else x
    grid = (b_pad // tm_eff,)

    # --- param preparation (bf16 weights for MXU, f32 biases) ---------------
    w1_bf = w1_t.astype(jnp.bfloat16)
    w2_bf = w2_t.astype(jnp.bfloat16)
    b1_2d = b1.reshape(1, D).astype(jnp.float32)
    b2_2d = b2.reshape(1, D).astype(jnp.float32)
    seed_arr = jnp.array([seed], dtype=jnp.int32)

    kernel = functools.partial(_residual_block_kernel, training=training, p=p)

    # --- VMEM budget: resident bf16 weights + double-buffered act tiles -----
    vmem_bytes = (
        2 * D * D * 2                 # two resident bf16 weight matrices
        + 2 * 2 * tm_eff * D * 4      # double-buffered x and out tiles (f32)
        + 2 * D * 4                   # biases
        + 4 * tm_eff * D * 4          # in-flight h / y temporaries headroom
    )
    vmem_limit = int(min(max(2 * vmem_bytes, 16 << 20), 100 << 20))

    cost = pl.CostEstimate(
        flops=2 * 2 * b_pad * D * D,                       # two DxD matmuls
        transcendentals=0,
        bytes_accessed=(2 * b_pad * D * 4                  # x in + out
                        + 2 * D * D * 2                    # bf16 weights
                        + 2 * D * 4),                      # biases
    )

    out = pl.pallas_call(
        kernel,
        out_shape=jax.ShapeDtypeStruct((b_pad, D), x.dtype),
        grid=grid,
        in_specs=[
            pl.BlockSpec(memory_space=pltpu.MemorySpace.SMEM),    # seed scalar
            pl.BlockSpec((tm_eff, D), lambda i: (i, 0)),          # x tile
            pl.BlockSpec((D, D), lambda i: (0, 0)),               # w1^T (resident)
            pl.BlockSpec((1, D), lambda i: (0, 0)),               # b1   (resident)
            pl.BlockSpec((D, D), lambda i: (0, 0)),               # w2^T (resident)
            pl.BlockSpec((1, D), lambda i: (0, 0)),               # b2   (resident)
        ],
        out_specs=pl.BlockSpec((tm_eff, D), lambda i: (i, 0)),
        compiler_params=pltpu.CompilerParams(
            dimension_semantics=("parallel",),      # megacore sharding on v7x
            vmem_limit_bytes=vmem_limit,
        ),
        cost_estimate=cost,
    )(seed_arr, x_in, w1_bf, b1_2d, w2_bf, b2_2d)

    return out[:B] if b_pad != B else out


def init_params(key, input_dim):
    """Deterministic init mimicking nn.Linear default (uniform +-1/sqrt(fan_in))."""
    k1, k2, k3, k4 = jax.random.split(key, 4)
    bound = 1.0 / (input_dim ** 0.5)
    # PyTorch Linear weight is [out, in]; transpose when calling the kernel.
    w1 = jax.random.uniform(k1, (input_dim, input_dim), jnp.float32, -bound, bound)
    b1 = jax.random.uniform(k2, (input_dim,), jnp.float32, -bound, bound)
    w2 = jax.random.uniform(k3, (input_dim, input_dim), jnp.float32, -bound, bound)
    b2 = jax.random.uniform(k4, (input_dim,), jnp.float32, -bound, bound)
    return w1, b1, w2, b2


def residual_block_ref(x, w1, b1, w2, b2):
    """Pure-JAX eval-mode reference with matching bf16 matmul inputs / f32 acc."""
    h = jnp.dot(x.astype(jnp.bfloat16), w1.T.astype(jnp.bfloat16),
                preferred_element_type=jnp.float32) + b1
    h = jnp.maximum(h, 0.0)
    y = jnp.dot(h.astype(jnp.bfloat16), w2.T.astype(jnp.bfloat16),
                preferred_element_type=jnp.float32) + b2
    y = jnp.maximum(y, 0.0)
    return y + x


if __name__ == "__main__":
    # D is a multiple of 128 (lane width); B tiled with TM=256 -> grid of 2
    # batch tiles so double-buffering / megacore sharding is exercised.
    B, D = 512, 128

    key = jax.random.PRNGKey(0)
    kx, kp = jax.random.split(key)
    x = jax.random.normal(kx, (B, D), jnp.float32)
    w1, b1, w2, b2 = init_params(kp, D)

    out = residual_block(
        x, w1.T, b1, w2.T, b2,
        training=False,   # eval-mode dropout = identity, deterministic
        tm=256,
    )
    out = jax.block_until_ready(out)

    ref = residual_block_ref(x, w1, b1, w2, b2)
    assert out.shape == (B, D)
    assert jnp.allclose(out, ref, atol=2e-2, rtol=2e-2), "mismatch vs reference"

    print("KERNEL_OK")
</pallas_src>

<mosaic_0001>
module attributes {stable_mosaic.version = 11 : i64} {
  func.func @_residual_block_kernel(%arg0: i32, %arg1: memref<1xi32, #tpu.memory_space<smem>>, %arg2: memref<256x128xf32, #tpu.memory_space<vmem>>, %arg3: memref<128x128xbf16, #tpu.memory_space<vmem>>, %arg4: memref<1x128xf32, #tpu.memory_space<vmem>>, %arg5: memref<128x128xbf16, #tpu.memory_space<vmem>>, %arg6: memref<1x128xf32, #tpu.memory_space<vmem>>, %arg7: memref<256x128xf32, #tpu.memory_space<vmem>>) attributes {dimension_semantics = [#tpu.dimension_semantics<parallel>], iteration_bounds = array<i64: 2>, scalar_prefetch = 0 : i64, scratch_operands = 0 : i64, tpu.core_type = #tpu.core_type<tc>, window_params = [{transform_indices = @transform_0, window_bounds = array<i64: 1>}, {transform_indices = @transform_1, window_bounds = array<i64: 256, 128>}, {pipeline_mode = #tpu.pipeline_mode<synchronous>, transform_indices = @transform_2, window_bounds = array<i64: 128, 128>}, {pipeline_mode = #tpu.pipeline_mode<synchronous>, transform_indices = @transform_3, window_bounds = array<i64: 1, 128>}, {pipeline_mode = #tpu.pipeline_mode<synchronous>, transform_indices = @transform_4, window_bounds = array<i64: 128, 128>}, {pipeline_mode = #tpu.pipeline_mode<synchronous>, transform_indices = @transform_5, window_bounds = array<i64: 1, 128>}, {transform_indices = @transform_6, window_bounds = array<i64: 256, 128>}]} {
    %c0 = arith.constant 0 : index
    %c0_0 = arith.constant 0 : index
    %0 = vector.load %arg2[%c0, %c0_0] : memref<256x128xf32, #tpu.memory_space<vmem>>, vector<256x128xf32>
    %1 = arith.truncf %0 : vector<256x128xf32> to vector<256x128xbf16>
    %c0_1 = arith.constant 0 : index
    %c0_2 = arith.constant 0 : index
    %2 = vector.load %arg3[%c0_1, %c0_2] : memref<128x128xbf16, #tpu.memory_space<vmem>>, vector<128x128xbf16>
    %cst = arith.constant dense<0.000000e+00> : vector<256x128xf32>
    %3 = tpu.matmul %1, %2, %cst {dimension_numbers = #tpu.dot_dimension_numbers<[1], [0], [0], [1], [0, 0, 1, 1], [], []>} : vector<256x128xbf16>, vector<128x128xbf16>, vector<256x128xf32> -> vector<256x128xf32>
    %c0_3 = arith.constant 0 : index
    %c0_4 = arith.constant 0 : index
    %4 = vector.load %arg4[%c0_3, %c0_4] : memref<1x128xf32, #tpu.memory_space<vmem>>, vector<1x128xf32>
    %5 = vector.broadcast %4 : vector<1x128xf32> to vector<256x128xf32>
    %6 = arith.addf %3, %5 : vector<256x128xf32>
    %cst_5 = arith.constant 0.000000e+00 : f32
    %7 = vector.broadcast %cst_5 : f32 to vector<256x128xf32>
    %8 = arith.maximumf %6, %7 : vector<256x128xf32>
    %9 = arith.truncf %8 : vector<256x128xf32> to vector<256x128xbf16>
    %c0_6 = arith.constant 0 : index
    %c0_7 = arith.constant 0 : index
    %10 = vector.load %arg5[%c0_6, %c0_7] : memref<128x128xbf16, #tpu.memory_space<vmem>>, vector<128x128xbf16>
    %cst_8 = arith.constant dense<0.000000e+00> : vector<256x128xf32>
    %11 = tpu.matmul %9, %10, %cst_8 {dimension_numbers = #tpu.dot_dimension_numbers<[1], [0], [0], [1], [0, 0, 1, 1], [], []>} : vector<256x128xbf16>, vector<128x128xbf16>, vector<256x128xf32> -> vector<256x128xf32>
    %c0_9 = arith.constant 0 : index
    %c0_10 = arith.constant 0 : index
    %12 = vector.load %arg6[%c0_9, %c0_10] : memref<1x128xf32, #tpu.memory_space<vmem>>, vector<1x128xf32>
    %13 = vector.broadcast %12 : vector<1x128xf32> to vector<256x128xf32>
    %14 = arith.addf %11, %13 : vector<256x128xf32>
    %cst_11 = arith.constant 0.000000e+00 : f32
    %15 = vector.broadcast %cst_11 : f32 to vector<256x128xf32>
    %16 = arith.maximumf %14, %15 : vector<256x128xf32>
    %17 = arith.addf %16, %0 : vector<256x128xf32>
    %c0_12 = arith.constant 0 : index
    %c0_13 = arith.constant 0 : index
    %18 = vector.load %arg7[%c0_12, %c0_13] : memref<256x128xf32, #tpu.memory_space<vmem>>, vector<256x128xf32>
    tpu.vector_store %arg7[%c0_12, %c0_13], %17 {strides = array<i32>} : memref<256x128xf32, #tpu.memory_space<vmem>>, vector<256x128xf32>,
    return
  }
  func.func @transform_0(%arg0: i32) -> i32 {
    %c0_i32 = arith.constant 0 : i32
    %c0_i32_0 = arith.constant 0 : i32
    return %c0_i32 : i32
  }
  func.func @transform_1(%arg0: i32) -> (i32, i32) {
    %c0_i32 = arith.constant 0 : i32
    %c0_i32_0 = arith.constant 0 : i32
    return %arg0, %c0_i32 : i32, i32
  }
  func.func @transform_2(%arg0: i32) -> (i32, i32) {
    %c0_i32 = arith.constant 0 : i32
    %c0_i32_0 = arith.constant 0 : i32
    %c0_i32_1 = arith.constant 0 : i32
    return %c0_i32, %c0_i32_0 : i32, i32
  }
  func.func @transform_3(%arg0: i32) -> (i32, i32) {
    %c0_i32 = arith.constant 0 : i32
    %c0_i32_0 = arith.constant 0 : i32
    %c0_i32_1 = arith.constant 0 : i32
    return %c0_i32, %c0_i32_0 : i32, i32
  }
  func.func @transform_4(%arg0: i32) -> (i32, i32) {
    %c0_i32 = arith.constant 0 : i32
    %c0_i32_0 = arith.constant 0 : i32
    %c0_i32_1 = arith.constant 0 : i32
    return %c0_i32, %c0_i32_0 : i32, i32
  }
  func.func @transform_5(%arg0: i32) -> (i32, i32) {
    %c0_i32 = arith.constant 0 : i32
    %c0_i32_0 = arith.constant 0 : i32
    %c0_i32_1 = arith.constant 0 : i32
    return %c0_i32, %c0_i32_0 : i32, i32
  }
  func.func @transform_6(%arg0: i32) -> (i32, i32) {
    %c0_i32 = arith.constant 0 : i32
    %c0_i32_0 = arith.constant 0 : i32
    return %arg0, %c0_i32 : i32, i32
  }
}

</mosaic_0001>

<bundles_post_ra>
// kernel: tpu_custom_call.1
= control target key start
LH: loop header
LB: loop body
LE: loop exit
PB: predicated region body
PF: predicated region fallthrough
CT: control target
= control target key end

     0   :  { %12 = vsyncpa [#allocation4], 0  ;;  %s2048_s0 = inlined_call_operand.<no memory space> [shape: s32[1], index: 0, kind: input, shape index: {}]   ;;  %s2049_s1 = inlined_call_operand.hbm [shape: f32[512,128], index: 1, kind: input, shape index: {}]   ;;  %s2050_s2 = inlined_call_operand.hbm [shape: bf16[128,128], index: 2, kind: input, shape index: {}]   ;;  %s2051_s3 = inlined_call_operand.vmem [shape: f32[1,128], index: 3, kind: input, shape index: {}]   ;;  %s2052_s4 = inlined_call_operand.hbm [shape: bf16[128,128], index: 4, kind: input, shape index: {}]   ;;  %s2053_s5 = inlined_call_operand.vmem [shape: f32[1,128], index: 5, kind: input, shape index: {}]   ;;  %s2054_s6 = inlined_call_operand.hbm [shape: f32[512,128], index: 6, kind: output, shape index: {}]  }
   0x1   :  { %14 = vsyncpa [#allocation4 + $0x1], 0 }
   0x2   :  { %15 = vsyncpa [#allocation7], 0 }
   0x3   :  { %16 = vsyncpa [#allocation5], 0 }
   0x4   :  { %18 = vsyncpa [#allocation5 + $0x1], 0  ;;  %s1539_s0 = smov 0   ;;  %s1541_s21 = smov 0  }
   0x5   :  { %s1543_s22 = smov 0   ;;  %s1545_s23 = smov 0  }
   0x6 LB: > { %s1560_s24 = sadd.s32 4294967295, %s1492_s23   ;;  %s1065_s25 = sadd.s32 4294967294, %s1492_s23   ;;  %s1492_s23 = sphi %s1545_s23, %s2074_s23   ;;  %s1488_s22 = sphi %s1543_s22, %s2073_s22   ;;  %s1484_s21 = sphi %s1541_s21, %s2072_s21   ;;  %s1480_s0 = sphi %s1539_s0, %s2071_s0  }
   0x7   : > { %p65_p0 = scmp.ne.s32.totalorder %s1484_s21, %s1480_s0  ;;  %p2055_p1 = scmp.eq.s32.totalorder %s1560_s24, 0 }
   0x8   : > { %p179_p3 = scmp.eq.s32.totalorder %s1065_s25, 1  ;;  %p1066_p5 = scmp.ge.s32.totalorder %s1492_s23, 1 }
   0x9   : > { %p1569_p4 = por %p2055_p1, %p65_p0  ;;  %p186_p7 = scmp.lt.s32.totalorder %s1492_s23, 3 }
   0xa   : > { %p1574_p6 = por %p179_p3, %p65_p0  ;;  %s1494_s29 = smov [#allocation6]  }
   0xb   : > { %s2058_s26 = scalar_select %p1569_p4, 1, 0 }
   0xc   : > { %s2059_s27 = scalar_select %p1574_p6, 1, 0 }
   0xd   : > { %p1579_p8 = pnand %p1066_p5, %p186_p7  ;;  %s201_s30 = sshll.u32 %s1494_s29, 4  ;;  %s1583_s30 = int_to_ptr.vmem [resolvable:$true] %s201_s30 }
   0xe   : > { %s1495_s8 = smov [#allocation8]   ;;  %s1336_s12 = scalar_lea.hbm %s2050_s2, 1024 }
   0xf   : > { %p1259_p9 = pneg %p1579_p8  ;;  %s217_s9 = sshll.u32 %s1495_s8, 4  ;;  %s1594_s9 = int_to_ptr.vmem [resolvable:$true] %s217_s9 }
  0x10   : > { %p1337_p12 = scmp.ne.s32.totalorder %s2050_s2, %s1336_s12  ;;  %p1343_p5 = scmp.lt.u32.totalorder %s1336_s12, %s2050_s2 }
  0x11   : > { %p1590_p11 = pnand %p1259_p9, %p2055_p1 }
  0x13   : > { %p1338_p13 = pneg %p1590_p11 }
  0x15   : > { %p1339_p0 = pnand %p1338_p13, %p1337_p12 }
  0x17   : > { %p1340_p3 = pneg %p1339_p0 }
  0x19   : > { %p1345_p7 = pnand %p1343_p5, %p1340_p3 }
  0x1b   : > { %1348 = shalt.err (!%p1345_p7)
}
  0x1c   : > { %s1349_s17 = scalar_lea.vmem %s1583_s30, 1024  ;;  %p1357_p2 = scmp.lt.s32.totalorder %s1583_s30, %s1583_s30 }
  0x1d   : > { %p1350_p9 = scmp.ne.s32.totalorder %s1583_s30, %s1349_s17  ;;  %p1358_p12 = scmp.lt.s32.totalorder %s1349_s17, %s1349_s17 }
  0x1f   : > { %p1352_p10 = pnand %p1350_p9, %p1338_p13  ;;  %p1359_p0 = por %p1358_p12, %p1357_p2 }
  0x21   : > { %p1353_p1 = pneg %p1352_p10 }
  0x23   : > { %p1360_p6 = pnand %p1359_p0, %p1353_p1 }
  0x25   : > { %1363 = shalt.err (!%p1360_p6)
}
  0x26   : > { %s1496_s18 = smov 64   ;;  %s1497_s19 = smov 4  }
  0x27   : > { %1262 = dma.hbm_to_vmem [thread:$0]  (!%p1590_p11), %s2050_s2, 1024, %s1583_s30, [#allocation7], %s1496_s18, %s1496_s18, %s1497_s19  }
  0x28   : > { %s1364_s10 = scalar_lea.hbm %s2052_s4, 1024 }
  0x29   : > { %p1365_p2 = scmp.ne.s32.totalorder %s2052_s4, %s1364_s10  ;;  %p1371_p10 = scmp.lt.u32.totalorder %s1364_s10, %s2052_s4 }
  0x2b   : > { %p1367_p1 = pnand %p1365_p2, %p1338_p13 }
  0x2d   : > { %p1368_p6 = pneg %p1367_p1 }
  0x2f   : > { %p1373_p3 = pnand %p1371_p10, %p1368_p6 }
  0x31   : > { %1376 = shalt.err (!%p1373_p3)
}
  0x32   : > { %s1377_s30 = scalar_lea.vmem %s1594_s9, 1024  ;;  %p1385_p12 = scmp.lt.s32.totalorder %s1594_s9, %s1594_s9 }
  0x33   : > { %p1378_p5 = scmp.ne.s32.totalorder %s1594_s9, %s1377_s30  ;;  %p1386_p0 = scmp.lt.s32.totalorder %s1377_s30, %s1377_s30 }
  0x35   : > { %p1380_p7 = pnand %p1378_p5, %p1338_p13  ;;  %p1387_p2 = por %p1386_p0, %p1385_p12 }
  0x37   : > { %p1381_p9 = pneg %p1380_p7 }
  0x39   : > { %p1388_p1 = pnand %p1387_p2, %p1381_p9 }
  0x3b   : > { %1391 = shalt.err (!%p1388_p1)
}
  0x3c   : > { %1265 = dma.hbm_to_vmem [thread:$0]  (!%p1590_p11), %s2052_s4, 1024, %s1594_s9, [#allocation7], %s1496_s18, %s1496_s18, %s1497_s19  }
  0x3d   : > { %s1649_s17 = sadd.s32 1, %s1492_s23   ;;  %s52_s7 = sadd.s32 1, %s1488_s22 }
  0x3e   : > { %s49_s20 = ssub.s32 %s1492_s23, %s1649_s17  ;;  %p59_p13 = scmp.ne.s32.totalorder %s1488_s22, %s1484_s21 }
  0x3f   : > { %p50_p6 = scmp.eq.s32.totalorder %s49_s20, 0  ;;  %p60_p10 = scmp.eq.s32.totalorder %s1492_s23, 0 }
  0x40   : > { %p2062_p3 = scmp.eq.s32.totalorder %s1560_s24, 1  ;;  %p1276_p7 = scmp.lt.s32.totalorder %s1492_s23, 2 }
  0x41   : > { %s1665_s29 = scalar_select %p50_p6, %s1488_s22, %s52_s7  }
  0x42   : > { %p1659_p5 = por %p2062_p3, %p59_p13  ;;  %p61_p9 = por %p60_p10, %p59_p13 }
  0x43   : > { %s234_s8 = sand.u32 1, %s1488_s22   ;;  %s1101_s9 = sshll.u32 %s1492_s23, 12 }
  0x44   : > { %s2063_s25 = scalar_select %p1659_p5, 1, 0 }
  0x45   : > { %s1070_s10 = sshll.u32 %s234_s8, 8  ;;  %s1672_s11 = scalar_lea.hbm %s2049_s1, %s1101_s9 }
  0x46   : > { %s238_s12 = scalar_lea.vmem [#allocation3], %s1070_s10  ;;  %p1676_p11 = pnand %p1276_p7, %p61_p9 }
  0x47   : > { %s245_s13 = sshll.u32 %s238_s12, 4  ;;  %s1680_s30 = scalar_lea.sflag [#allocation4], %s234_s8  ;;  %s1674_s13 = int_to_ptr.vmem [resolvable:$true] %s245_s13 }
  0x48   : > { %s1392_s15 = scalar_lea.hbm %s1672_s11, 4096  ;;  %p1394_p0 = pneg %p1676_p11 }
  0x49   : > { %p1393_p12 = scmp.ne.s32.totalorder %s1672_s11, %s1392_s15  ;;  %s1397_s20 = scalar_lea.hbm %s2049_s1, 8192 }
  0x4a   : > { %p1398_p13 = scmp.lt.u32.totalorder %s1672_s11, %s2049_s1  ;;  %p1399_p6 = scmp.lt.u32.totalorder %s1397_s20, %s1392_s15 }
  0x4b   : > { %p1395_p2 = pnand %p1394_p0, %p1393_p12  ;;  %p1401_p3 = scmp.lt.u32.totalorder %s1392_s15, %s1672_s11 }
  0x4c   : > { %p1400_p10 = por %p1399_p6, %p1398_p13 }
  0x4d   : > { %p1396_p1 = pneg %p1395_p2 }
  0x4e   : > { %p1402_p7 = por %p1401_p3, %p1400_p10 }
  0x50   : > { %p1403_p9 = pnand %p1402_p7, %p1396_p1 }
  0x52   : > { %1406 = shalt.err (!%p1403_p9)
}
  0x53   : > { %s1407_s8 = scalar_lea.vmem %s1674_s13, 4096  ;;  %s1498_s18 = smov [#allocation3]  }
  0x54   : > { %p1408_p12 = scmp.ne.s32.totalorder %s1674_s13, %s1407_s8  ;;  %s1412_s19 = sshll.u32 %s1498_s18, 4  ;;  %s1413_s19 = int_to_ptr.vmem [resolvable:$false] %s1412_s19 }
  0x55   : > { %s1414_s12 = scalar_lea.vmem %s1413_s19, 8192  ;;  %p1415_p4 = scmp.lt.s32.totalorder %s1674_s13, %s1413_s19 }
  0x56   : > { %p1410_p2 = pnand %p1408_p12, %p1394_p0  ;;  %p1416_p13 = scmp.lt.s32.totalorder %s1414_s12, %s1407_s8 }
  0x58   : > { %p1411_p5 = pneg %p1410_p2  ;;  %p1417_p6 = por %p1416_p13, %p1415_p4 }
  0x5a   : > { %p1418_p10 = pnand %p1417_p6, %p1411_p5 }
  0x5c   : > { %1421 = shalt.err (!%p1418_p10)
}
  0x5d   : > { %s1499_s15 = smov 128   ;;  %s1500_s16 = smov 8  }
  0x5e   : > { %1269 = dma.hbm_to_vmem [thread:$0]  (!%p1676_p11), %s1672_s11, 4096, %s1674_s13, %s1680_s30, %s1499_s15, %s1499_s15, %s1500_s16  }
  0x5f   : > { %257 = sbr.rel (%p1579_p8) target bundleno = 653 (0x28d), region = 44  ;;  %s1711_s7 = sand.u32 (!%p1579_p8), 1, %s1484_s21  }
  0x60   : > { %s1074_s20 = sshll.u32 (!%p1579_p8), %s1711_s7, 8  ;;  %s260_s10 = scalar_lea.sflag (!%p1579_p8), [#allocation4], %s1711_s7 }
  0x61   : > { %s1717_s9 = scalar_lea.vmem (!%p1579_p8), [#allocation3], %s1074_s20  ;;  %p2065_p4 = scmp.ne.s32.totalorder (!%p1579_p8), %s2058_s26, 0 }
  0x66   : > { %1467 = dma.done.wait (%p2065_p4), %s260_s10, 4096  }
  0x67   : > { %1469 = vsyncadd (%p2065_p4), %s260_s10, 4294963200  ;;  %p2066_p5 = scmp.eq.s32.totalorder %s1560_s24, 0 }
  0x69   : > { %1471 = dma.done.wait (%p2066_p5), [#allocation7], 2048   ;;  %p2067_p8 = pmov %p2066_p5 }
  0x6a   : > { %v1320_v0 = vld [vmem:[#allocation6] sm:$0xff]   ;;  %v1321_v1 = vld [vmem:[#allocation6 + $0x8] sm:$0xff]   ;;  %v1322_v2 = vld [vmem:[#allocation6 + $0x10] sm:$0xff]   ;;  %s1905_s14 = scalar_lea.vmem [#allocation9], %s1074_s20  ;;  %s1102_s30 = sshll.u32 %s1560_s24, 12 }
  0x6b   : > { %1473 = vsyncadd (%p2067_p8), [#allocation7], 4294965248  ;;  %1151 = vmatprep.subr.bf16.mxu0 %v1320_v0  ;;  %v1323_v3 = vld [vmem:[#allocation6 + $0x18] sm:$0xff]   ;;  %v1728_v4 = vld [vmem:[%s1717_s9] sm:$0xff]  ;;  %s973_s8 = sshll.u32 %s1905_s14, 4  ;;  %s1998_s12 = scalar_lea.hbm %s2054_s6, %s1102_s30  ;;  %s2000_s8 = int_to_ptr.vmem [resolvable:$true] %s973_s8 }
  0x6c   : > { %1152 = vmatpush3.bf16.msra.mxu0 %v1320_v0  ;;  %v1731_v5 = vld [vmem:[%s1717_s9 + $0x8] sm:$0xff]  ;;  %v1324_v7 = vld [vmem:[#allocation6 + $0x20] sm:$0xff]   ;;  %v1326_v9 = vld [vmem:[#allocation6 + $0x30] sm:$0xff]   ;;  %s960_s24 = scalar_lea.sflag [#allocation5], %s1711_s7  ;;  %s1422_s15 = scalar_lea.vmem %s2000_s8, 4096 }
  0x6d   : > { %1153 = vmatprep.subr.bf16.mxu0 %v1321_v1  ;;  %v335_v6 = vpack.c.bf16 %v1731_v5, %v1728_v4  ;;  %v1325_v8 = vld [vmem:[#allocation6 + $0x28] sm:$0xff]   ;;  %v1328_v10 = vld [vmem:[#allocation8] sm:$0xff]   ;;  %v1330_v12 = vld [vmem:[#allocation8 + $0x10] sm:$0xff]   ;;  %p1423_p11 = scmp.ne.s32.totalorder %s2000_s8, %s1422_s15  ;;  %p2068_p0 = scmp.ne.s32.totalorder %s2063_s25, 0 }
  0x6e   : > { %v1329_v11 = vld [vmem:[#allocation8 + $0x8] sm:$0xff]   ;;  %1199 = vmatprep.subr.bf16.mxu1 %v1328_v10  ;;  %v1327_v13 = vld [vmem:[#allocation6 + $0x38] sm:$0xff]   ;;  %v1736_v14 = vld [vmem:[%s1717_s9 + $0x10] sm:$0xff]  ;;  %s1501_s16 = smov [#allocation9]  }
  0x6f   : > { %1167 = vmatprep.mubr.bf16.mxu0 %v335_v6  ;;  %1200 = vmatpush3.bf16.msra.mxu1 %v1328_v10  ;;  %v1739_v15 = vld [vmem:[%s1717_s9 + $0x18] sm:$0xff]  ;;  %v1742_v17 = vld [vmem:[%s1717_s9 + $0x20] sm:$0xff]  ;;  %v1745_v18 = vld [vmem:[%s1717_s9 + $0x28] sm:$0xff]  ;;  %p1424_p1 = pnand %p1423_p11, %p2068_p0  ;;  %s1426_s20 = sshll.u32 %s1501_s16, 4  ;;  %s1427_s20 = int_to_ptr.vmem [resolvable:$false] %s1426_s20 }
  0x70   : > { %1154 = vmatpush3.bf16.msra.mxu0 %v1321_v1  ;;  %1201 = vmatprep.subr.bf16.mxu1 %v1329_v11  ;;  %v1331_v16 = vld [vmem:[#allocation8 + $0x18] sm:$0xff]   ;;  %v336_v19 = vpack.c.bf16 %v1739_v15, %v1736_v14  ;;  %v337_v20 = vpack.c.bf16 %v1745_v18, %v1742_v17  ;;  %v1332_v21 = vld [vmem:[#allocation8 + $0x20] sm:$0xff]   ;;  %v1752_v22 = vld [vmem:[%s1717_s9 + $0x30] sm:$0xff]  ;;  %s1428_s10 = scalar_lea.vmem %s1427_s20, 8192  ;;  %p1429_p7 = scmp.lt.s32.totalorder %s2000_s8, %s1427_s20 }
  0x71   : > { %1155 = vmatprep.subr.bf16.mxu0 %v1322_v2  ;;  %v1755_v23 = vld [vmem:[%s1717_s9 + $0x38] sm:$0xff]  ;;  %v1333_v24 = vld [vmem:[#allocation8 + $0x28] sm:$0xff]   ;;  %v1758_v25 = vld [vmem:[%s1717_s9 + $0x40] sm:$0xff]  ;;  %p1425_p3 = pneg %p1424_p1  ;;  %p1430_p9 = scmp.lt.s32.totalorder %s1428_s10, %s1422_s15 }
  0x72   : > { %v1761_v26 = vld [vmem:[%s1717_s9 + $0x48] sm:$0xff]  ;;  %v338_v27 = vpack.c.bf16 %v1755_v23, %v1752_v22  ;;  %v1768_v29 = vld [vmem:[%s1717_s9 + $0x50] sm:$0xff]  ;;  %v1771_v30 = vld [vmem:[%s1717_s9 + $0x58] sm:$0xff] }
  0x73   : > { %1202 = vmatpush3.bf16.msra.mxu1 %v1329_v11  ;;  %v339_v28 = vpack.c.bf16 %v1761_v26, %v1758_v25  ;;  %v1774_v31 = vld [vmem:[%s1717_s9 + $0x60] sm:$0xff]  ;;  %v1777_v32 = vld [vmem:[%s1717_s9 + $0x68] sm:$0xff]  ;;  %v340_v33 = vpack.c.bf16 %v1771_v30, %v1768_v29  ;;  %v1784_v35 = vld [vmem:[%s1717_s9 + $0x70] sm:$0xff]  ;;  %p1431_p12 = por %p1430_p9, %p1429_p7 }
  0x74   : > { %1156 = vmatpush3.bf16.msra.mxu0 %v1322_v2  ;;  %1203 = vmatprep.subr.bf16.mxu1 %v1330_v12  ;;  %v341_v34 = vpack.c.bf16 %v1777_v32, %v1774_v31  ;;  %v1787_v36 = vld [vmem:[%s1717_s9 + $0x78] sm:$0xff]  ;;  %v1790_v37 = vld [vmem:[%s1717_s9 + $0x80] sm:$0xff]  ;;  %v1793_v38 = vld [vmem:[%s1717_s9 + $0x88] sm:$0xff] }
  0x75   : > { %1157 = vmatprep.subr.bf16.mxu0 %v1323_v3  ;;  %v342_v39 = vpack.c.bf16 %v1787_v36, %v1784_v35  ;;  %v343_v40 = vpack.c.bf16 %v1793_v38, %v1790_v37  ;;  %v1800_v41 = vld [vmem:[%s1717_s9 + $0x90] sm:$0xff]  ;;  %v1803_v42 = vld [vmem:[%s1717_s9 + $0x98] sm:$0xff]  ;;  %v1806_v43 = vld [vmem:[%s1717_s9 + $0xa0] sm:$0xff]  ;;  %p1432_p2 = pnand %p1431_p12, %p1425_p3 }
  0x76   : > { %v1809_v44 = vld [vmem:[%s1717_s9 + $0xa8] sm:$0xff]  ;;  %v344_v45 = vpack.c.bf16 %v1803_v42, %v1800_v41  ;;  %v1816_v47 = vld [vmem:[%s1717_s9 + $0xb0] sm:$0xff]  ;;  %v1819_v48 = vld [vmem:[%s1717_s9 + $0xb8] sm:$0xff] }
  0x77   : > { %1204 = vmatpush3.bf16.msra.mxu1 %v1330_v12  ;;  %v345_v46 = vpack.c.bf16 %v1809_v44, %v1806_v43  ;;  %v1822_v49 = vld [vmem:[%s1717_s9 + $0xc0] sm:$0xff]  ;;  %v1825_v50 = vld [vmem:[%s1717_s9 + $0xc8] sm:$0xff]  ;;  %v346_v51 = vpack.c.bf16 %v1819_v48, %v1816_v47  ;;  %v1832_v53 = vld [vmem:[%s1717_s9 + $0xd0] sm:$0xff] }
  0x78   : > { %1158 = vmatpush3.bf16.msra.mxu0 %v1323_v3  ;;  %1205 = vmatprep.subr.bf16.mxu1 %v1331_v16  ;;  %v347_v52 = vpack.c.bf16 %v1825_v50, %v1822_v49  ;;  %v1835_v54 = vld [vmem:[%s1717_s9 + $0xd8] sm:$0xff]  ;;  %v1838_v55 = vld [vmem:[%s1717_s9 + $0xe0] sm:$0xff]  ;;  %v1841_v56 = vld [vmem:[%s1717_s9 + $0xe8] sm:$0xff] }
  0x79   : > { %1159 = vmatprep.subr.bf16.mxu0 %v1324_v7  ;;  %v348_v57 = vpack.c.bf16 %v1835_v54, %v1832_v53  ;;  %v349_v58 = vpack.c.bf16 %v1841_v56, %v1838_v55  ;;  %v1848_v59 = vld [vmem:[%s1717_s9 + $0xf0] sm:$0xff]  ;;  %v1851_v60 = vld [vmem:[%s1717_s9 + $0xf8] sm:$0xff]  ;;  %v1858_v0 = vld [vmem:[%s2051_s3] ss:$0 sm:$0xff] }
  0x7a   : > { %v350_v61 = vpack.c.bf16 %v1851_v60, %v1848_v59  ;;  %v1334_v62 = vld [vmem:[#allocation8 + $0x30] sm:$0xff]   ;;  %v1335_v63 = vld [vmem:[#allocation8 + $0x38] sm:$0xff]  }
  0x7b   : > { %1206 = vmatpush3.bf16.msra.mxu1 %v1331_v16 }
  0x7c   : > { %1160 = vmatpush3.bf16.msra.mxu0 %v1324_v7  ;;  %1207 = vmatprep.subr.bf16.mxu1 %v1332_v21 }
  0x7d   : > { %1161 = vmatprep.subr.bf16.mxu0 %v1325_v8 }
  0x7f   : > { %1208 = vmatpush3.bf16.msra.mxu1 %v1332_v21 }
  0x80   : > { %1162 = vmatpush3.bf16.msra.mxu0 %v1325_v8  ;;  %1209 = vmatprep.subr.bf16.mxu1 %v1333_v24 }
  0x81   : > { %1163 = vmatprep.subr.bf16.mxu0 %v1326_v9 }
  0x83   : > { %1210 = vmatpush3.bf16.msra.mxu1 %v1333_v24 }
  0x84   : > { %1164 = vmatpush3.bf16.msra.mxu0 %v1326_v9  ;;  %1211 = vmatprep.subr.bf16.mxu1 %v1334_v62 }
  0x85   : > { %1165 = vmatprep.subr.bf16.mxu0 %v1327_v13 }
  0x87   : > { %1212 = vmatpush3.bf16.msra.mxu1 %v1334_v62 }
  0x88   : > { %1166 = vmatpush3.bf16.msra.mxu0 %v1327_v13  ;;  %1213 = vmatprep.subr.bf16.mxu1 %v1335_v63 }
  0x8b   : > { %1168 = vmatmul.mubr.bf16.vlgmr.msra.gmra.mrb[0].mxu0 %v336_v19  ;;  %1214 = vmatpush3.bf16.msra.mxu1 %v1335_v63 }
  0x8c   : > { %1171 = vmatprep.mubr.bf16.mxu0 %v337_v20 }
  0x93   : > { %1172 = vmatmul.mubr.bf16.gmra.mrb[4].mxu0 %v338_v27 }
  0x94   : > { %1175 = vmatprep.mubr.bf16.mxu0 %v339_v28 }
  0x9b   : > { %1176 = vmatmul.mubr.bf16.gmra.mrb[8].mxu0 %v340_v33 }
  0x9c   : > { %1179 = vmatprep.mubr.bf16.mxu0 %v341_v34 }
  0xa3   : > { %1180 = vmatmul.mubr.bf16.gmra.mrb[12].mxu0 %v342_v39 }
  0xa4   : > { %1183 = vmatprep.mubr.bf16.mxu0 %v343_v40 }
  0xab   : > { %1184 = vmatmul.mubr.bf16.gmra.mrb[16].mxu0 %v344_v45 }
  0xac   : > { %1187 = vmatprep.mubr.bf16.mxu0 %v345_v46 }
  0xb3   : > { %1188 = vmatmul.mubr.bf16.gmra.mrb[20].mxu0 %v346_v51 }
  0xb4   : > { %1191 = vmatprep.mubr.bf16.mxu0 %v347_v52 }
  0xbb   : > { %1192 = vmatmul.mubr.bf16.gmra.mrb[24].mxu0 %v348_v57 }
  0xbc   : > { %1195 = vmatprep.mubr.bf16.mxu0 %v349_v58 }
  0xc3   : > { %1196 = vmatmul.mubr.bf16.gmra.mrb[28].mxu0 %v350_v61 }
 0x15e   : > { %v1169_v1 = vpop.f32.mrb[0].mxu0 }
 0x15f   : > { %v465_v2 = vadd.f32 %v1169_v1, %v1858_v0  ;;  %v456_v3 = vpop.f32.mrb[1].mxu0 }
 0x160   : > { %v457_v6 = vadd.f32 %v1858_v0, %v456_v3  ;;  %v1170_v7 = vpop.f32.mrb[2].mxu0 }
 0x161   : > { %v468_v8 = vadd.f32 %v1170_v7, %v1858_v0  ;;  %v459_v9 = vpop.f32.mrb[3].mxu0  ;;  %v585_v11 = vmax.f32 %v465_v2, 0.0 }
 0x162   : > { %v460_v10 = vadd.f32 %v1858_v0, %v459_v9  ;;  %v583_v13 = vmax.f32 %v457_v6, 0.0 }
 0x163   : > { %v586_v12 = vmax.f32 %v468_v8, 0.0 }
 0x164   : > { %v584_v16 = vmax.f32 %v460_v10, 0.0 }
 0x165   : > { %v616_v19 = vpack.c.bf16 %v586_v12, %v585_v11 }
 0x166   : > { %v1173_v20 = vpop.f32.mrb[4].mxu0  ;;  %v615_v21 = vpack.c.bf16 %v584_v16, %v583_v13 }
 0x167   : > { %v481_v24 = vadd.f32 %v1173_v20, %v1858_v0  ;;  %v472_v27 = vpop.f32.mrb[5].mxu0 }
 0x168   : > { %v473_v28 = vadd.f32 %v1858_v0, %v472_v27  ;;  %v1174_v33 = vpop.f32.mrb[6].mxu0  ;;  %1215 = vmatprep.mubr.bf16.mxu1 %v615_v21 }
 0x169   : > { %v484_v34 = vadd.f32 %v1174_v33, %v1858_v0  ;;  %v475_v39 = vpop.f32.mrb[7].mxu0  ;;  %1216 = vmatmul.mubr.bf16.vlgmr.msra.gmra.mrb[0].mxu1 %v616_v19  ;;  %v589_v45 = vmax.f32 %v481_v24, 0.0 }
 0x16a   : > { %v476_v40 = vadd.f32 %v1858_v0, %v475_v39  ;;  %v587_v51 = vmax.f32 %v473_v28, 0.0 }
 0x16b   : > { %v590_v46 = vmax.f32 %v484_v34, 0.0 }
 0x16c   : > { %v588_v52 = vmax.f32 %v476_v40, 0.0 }
 0x16d   : > { %v618_v57 = vpack.c.bf16 %v590_v46, %v589_v45 }
 0x16e   : > { %v617_v58 = vpack.c.bf16 %v588_v52, %v587_v51  ;;  %v1177_v61 = vpop.f32.mrb[8].mxu0 }
 0x16f   : > { %v497_v62 = vadd.f32 %v1177_v61, %v1858_v0  ;;  %v488_v63 = vpop.f32.mrb[9].mxu0 }
 0x170   : > { %v489_v1 = vadd.f32 %v1858_v0, %v488_v63  ;;  %v1178_v2 = vpop.f32.mrb[10].mxu0  ;;  %1219 = vmatprep.mubr.bf16.mxu1 %v617_v58 }
 0x171   : > { %v500_v3 = vadd.f32 %v1178_v2, %v1858_v0  ;;  %v491_v6 = vpop.f32.mrb[11].mxu0  ;;  %1220 = vmatmul.mubr.bf16.gmra.mrb[4].mxu1 %v618_v57  ;;  %v593_v8 = vmax.f32 %v497_v62, 0.0 }
 0x172   : > { %v492_v7 = vadd.f32 %v1858_v0, %v491_v6  ;;  %v591_v10 = vmax.f32 %v489_v1, 0.0 }
 0x173   : > { %v594_v9 = vmax.f32 %v500_v3, 0.0 }
 0x174   : > { %v592_v11 = vmax.f32 %v492_v7, 0.0 }
 0x175   : > { %v620_v12 = vpack.c.bf16 %v594_v9, %v593_v8 }
 0x176   : > { %v619_v13 = vpack.c.bf16 %v592_v11, %v591_v10  ;;  %v1181_v16 = vpop.f32.mrb[12].mxu0 }
 0x177   : > { %v513_v19 = vadd.f32 %v1181_v16, %v1858_v0  ;;  %v504_v20 = vpop.f32.mrb[13].mxu0 }
 0x178   : > { %v505_v21 = vadd.f32 %v1858_v0, %v504_v20  ;;  %v1182_v24 = vpop.f32.mrb[14].mxu0  ;;  %1223 = vmatprep.mubr.bf16.mxu1 %v619_v13 }
 0x179   : > { %v516_v27 = vadd.f32 %v1182_v24, %v1858_v0  ;;  %v507_v28 = vpop.f32.mrb[15].mxu0  ;;  %1224 = vmatmul.mubr.bf16.gmra.mrb[8].mxu1 %v620_v12  ;;  %v597_v34 = vmax.f32 %v513_v19, 0.0 }
 0x17a   : > { %v508_v33 = vadd.f32 %v1858_v0, %v507_v28  ;;  %v595_v40 = vmax.f32 %v505_v21, 0.0 }
 0x17b   : > { %v598_v39 = vmax.f32 %v516_v27, 0.0 }
 0x17c   : > { %v596_v45 = vmax.f32 %v508_v33, 0.0 }
 0x17d   : > { %v622_v46 = vpack.c.bf16 %v598_v39, %v597_v34 }
 0x17e   : > { %v621_v51 = vpack.c.bf16 %v596_v45, %v595_v40  ;;  %v1185_v52 = vpop.f32.mrb[16].mxu0 }
 0x17f   : > { %v529_v57 = vadd.f32 %v1185_v52, %v1858_v0  ;;  %v520_v58 = vpop.f32.mrb[17].mxu0 }
 0x180   : > { %v521_v61 = vadd.f32 %v1858_v0, %v520_v58  ;;  %v1186_v62 = vpop.f32.mrb[18].mxu0  ;;  %1227 = vmatprep.mubr.bf16.mxu1 %v621_v51 }
 0x181   : > { %v532_v63 = vadd.f32 %v1186_v62, %v1858_v0  ;;  %v523_v1 = vpop.f32.mrb[19].mxu0  ;;  %1228 = vmatmul.mubr.bf16.gmra.mrb[12].mxu1 %v622_v46  ;;  %v601_v3 = vmax.f32 %v529_v57, 0.0 }
 0x182   : > { %v524_v2 = vadd.f32 %v1858_v0, %v523_v1  ;;  %v599_v7 = vmax.f32 %v521_v61, 0.0 }
 0x183   : > { %v602_v6 = vmax.f32 %v532_v63, 0.0 }
 0x184   : > { %v600_v8 = vmax.f32 %v524_v2, 0.0 }
 0x185   : > { %v624_v9 = vpack.c.bf16 %v602_v6, %v601_v3 }
 0x186   : > { %v623_v10 = vpack.c.bf16 %v600_v8, %v599_v7  ;;  %v1189_v11 = vpop.f32.mrb[20].mxu0 }
 0x187   : > { %v545_v12 = vadd.f32 %v1189_v11, %v1858_v0  ;;  %v536_v13 = vpop.f32.mrb[21].mxu0 }
 0x188   : > { %v537_v16 = vadd.f32 %v1858_v0, %v536_v13  ;;  %v1190_v19 = vpop.f32.mrb[22].mxu0  ;;  %1231 = vmatprep.mubr.bf16.mxu1 %v623_v10 }
 0x189   : > { %v548_v20 = vadd.f32 %v1190_v19, %v1858_v0  ;;  %v539_v21 = vpop.f32.mrb[23].mxu0  ;;  %1232 = vmatmul.mubr.bf16.gmra.mrb[16].mxu1 %v624_v9  ;;  %v605_v27 = vmax.f32 %v545_v12, 0.0 }
 0x18a   : > { %v540_v24 = vadd.f32 %v1858_v0, %v539_v21  ;;  %v603_v33 = vmax.f32 %v537_v16, 0.0 }
 0x18b   : > { %v606_v28 = vmax.f32 %v548_v20, 0.0 }
 0x18c   : > { %v604_v34 = vmax.f32 %v540_v24, 0.0 }
 0x18d   : > { %v626_v39 = vpack.c.bf16 %v606_v28, %v605_v27 }
 0x18e   : > { %v625_v40 = vpack.c.bf16 %v604_v34, %v603_v33  ;;  %v1193_v45 = vpop.f32.mrb[24].mxu0  ;;  %v1895_v34 = vld [vmem:[%s2053_s5] ss:$0 sm:$0xff] }
 0x18f   : > { %v561_v46 = vadd.f32 %v1193_v45, %v1858_v0  ;;  %v552_v51 = vpop.f32.mrb[25].mxu0 }
 0x190   : > { %v553_v52 = vadd.f32 %v1858_v0, %v552_v51  ;;  %v1194_v57 = vpop.f32.mrb[26].mxu0  ;;  %1235 = vmatprep.mubr.bf16.mxu1 %v625_v40 }
 0x191   : > { %v564_v58 = vadd.f32 %v1194_v57, %v1858_v0  ;;  %v555_v61 = vpop.f32.mrb[27].mxu0  ;;  %1236 = vmatmul.mubr.bf16.gmra.mrb[20].mxu1 %v626_v39  ;;  %v609_v63 = vmax.f32 %v561_v46, 0.0 }
 0x192   : > { %v556_v62 = vadd.f32 %v1858_v0, %v555_v61  ;;  %v607_v2 = vmax.f32 %v553_v52, 0.0 }
 0x193   : > { %v610_v1 = vmax.f32 %v564_v58, 0.0 }
 0x194   : > { %v608_v3 = vmax.f32 %v556_v62, 0.0 }
 0x195   : > { %v628_v6 = vpack.c.bf16 %v610_v1, %v609_v63 }
 0x196   : > { %v627_v7 = vpack.c.bf16 %v608_v3, %v607_v2  ;;  %v1197_v8 = vpop.f32.mrb[28].mxu0 }
 0x197   : > { %v577_v9 = vadd.f32 %v1197_v8, %v1858_v0  ;;  %v568_v10 = vpop.f32.mrb[29].mxu0 }
 0x198   : > { %v569_v11 = vadd.f32 %v1858_v0, %v568_v10  ;;  %v1198_v12 = vpop.f32.mrb[30].mxu0  ;;  %1239 = vmatprep.mubr.bf16.mxu1 %v627_v7 }
 0x199   : > { %v580_v13 = vadd.f32 %v1198_v12, %v1858_v0  ;;  %v571_v16 = vpop.f32.mrb[31].mxu0  ;;  %1240 = vmatmul.mubr.bf16.gmra.mrb[24].mxu1 %v628_v6  ;;  %v613_v20 = vmax.f32 %v577_v9, 0.0 }
 0x19a   : > { %v572_v19 = vadd.f32 %v1858_v0, %v571_v16  ;;  %v611_v24 = vmax.f32 %v569_v11, 0.0 }
 0x19b   : > { %v614_v21 = vmax.f32 %v580_v13, 0.0 }
 0x19c   : > { %v612_v27 = vmax.f32 %v572_v19, 0.0 }
 0x19d   : > { %v630_v28 = vpack.c.bf16 %v614_v21, %v613_v20 }
 0x19e   : > { %v629_v33 = vpack.c.bf16 %v612_v27, %v611_v24 }
 0x1a0   : > { %1243 = vmatprep.mubr.bf16.mxu1 %v629_v33 }
 0x1a1   : > { %1244 = vmatmul.mubr.bf16.gmra.mrb[28].mxu1 %v630_v28 }
 0x23c   : > { %v1217_v39 = vpop.f32.mrb[0].mxu1 }
 0x23d   : > { %v745_v40 = vadd.f32 %v1217_v39, %v1895_v34  ;;  %v736_v45 = vpop.f32.mrb[1].mxu1 }
 0x23e   : > { %v737_v0 = vadd.f32 %v1895_v34, %v736_v45  ;;  %v1218_v46 = vpop.f32.mrb[2].mxu1 }
 0x23f   : > { %v865_v51 = vmax.f32 %v745_v40, 0.0  ;;  %v748_v52 = vadd.f32 %v1218_v46, %v1895_v34  ;;  %v739_v57 = vpop.f32.mrb[3].mxu1 }
 0x240   : > { %v863_v58 = vmax.f32 %v737_v0, 0.0  ;;  %v740_v61 = vadd.f32 %v1895_v34, %v739_v57 }
 0x241   : > { %v897_v62 = vadd.f32 %v865_v51, %v1736_v14  ;;  %v866_v63 = vmax.f32 %v748_v52, 0.0 }
 0x242   : > { %v895_v1 = vadd.f32 %v863_v58, %v1728_v4  ;;  %v864_v2 = vmax.f32 %v740_v61, 0.0 }
 0x243   : > { %929 = vst [vmem:[%s1905_s14 + $0x10] sm:$0xff] %v897_v62  ;;  %v898_v3 = vadd.f32 %v866_v63, %v1739_v15 }
 0x244   : > { %927 = vst [vmem:[%s1905_s14] sm:$0xff] %v895_v1  ;;  %v896_v6 = vadd.f32 %v864_v2, %v1731_v5  ;;  %v1221_v7 = vpop.f32.mrb[4].mxu1 }
 0x245   : > { %930 = vst [vmem:[%s1905_s14 + $0x18] sm:$0xff] %v898_v3  ;;  %v761_v14 = vadd.f32 %v1221_v7, %v1895_v34  ;;  %v752_v4 = vpop.f32.mrb[5].mxu1 }
 0x246   : > { %928 = vst [vmem:[%s1905_s14 + $0x8] sm:$0xff] %v896_v6  ;;  %v753_v8 = vadd.f32 %v1895_v34, %v752_v4  ;;  %v1222_v9 = vpop.f32.mrb[6].mxu1 }
 0x247   : > { %v869_v10 = vmax.f32 %v761_v14, 0.0  ;;  %v764_v11 = vadd.f32 %v1222_v9, %v1895_v34  ;;  %v755_v15 = vpop.f32.mrb[7].mxu1 }
 0x248   : > { %v867_v12 = vmax.f32 %v753_v8, 0.0  ;;  %v756_v5 = vadd.f32 %v1895_v34, %v755_v15 }
 0x249   : > { %v901_v13 = vadd.f32 %v869_v10, %v1752_v22  ;;  %v870_v16 = vmax.f32 %v764_v11, 0.0 }
 0x24a   : > { %v899_v19 = vadd.f32 %v867_v12, %v1742_v17  ;;  %v868_v20 = vmax.f32 %v756_v5, 0.0 }
 0x24b   : > { %933 = vst [vmem:[%s1905_s14 + $0x30] sm:$0xff] %v901_v13  ;;  %v902_v21 = vadd.f32 %v870_v16, %v1755_v23 }
 0x24c   : > { %931 = vst [vmem:[%s1905_s14 + $0x20] sm:$0xff] %v899_v19  ;;  %v900_v24 = vadd.f32 %v868_v20, %v1745_v18  ;;  %v1225_v27 = vpop.f32.mrb[8].mxu1 }
 0x24d   : > { %934 = vst [vmem:[%s1905_s14 + $0x38] sm:$0xff] %v902_v21  ;;  %v777_v28 = vadd.f32 %v1225_v27, %v1895_v34  ;;  %v768_v33 = vpop.f32.mrb[9].mxu1 }
 0x24e   : > { %932 = vst [vmem:[%s1905_s14 + $0x28] sm:$0xff] %v900_v24  ;;  %v769_v22 = vadd.f32 %v1895_v34, %v768_v33  ;;  %v1226_v39 = vpop.f32.mrb[10].mxu1 }
 0x24f   : > { %v873_v17 = vmax.f32 %v777_v28, 0.0  ;;  %v780_v40 = vadd.f32 %v1226_v39, %v1895_v34  ;;  %v771_v23 = vpop.f32.mrb[11].mxu1 }
 0x250   : > { %v871_v45 = vmax.f32 %v769_v22, 0.0  ;;  %v772_v18 = vadd.f32 %v1895_v34, %v771_v23 }
 0x251   : > { %v905_v0 = vadd.f32 %v873_v17, %v1768_v29  ;;  %v874_v46 = vmax.f32 %v780_v40, 0.0 }
 0x252   : > { %v903_v51 = vadd.f32 %v871_v45, %v1758_v25  ;;  %v872_v52 = vmax.f32 %v772_v18, 0.0 }
 0x253   : > { %937 = vst [vmem:[%s1905_s14 + $0x50] sm:$0xff] %v905_v0  ;;  %v906_v57 = vadd.f32 %v874_v46, %v1771_v30 }
 0x254   : > { %935 = vst [vmem:[%s1905_s14 + $0x40] sm:$0xff] %v903_v51  ;;  %v904_v58 = vadd.f32 %v872_v52, %v1761_v26  ;;  %v1229_v61 = vpop.f32.mrb[12].mxu1 }
 0x255   : > { %938 = vst [vmem:[%s1905_s14 + $0x58] sm:$0xff] %v906_v57  ;;  %v793_v62 = vadd.f32 %v1229_v61, %v1895_v34  ;;  %v784_v63 = vpop.f32.mrb[13].mxu1 }
 0x256   : > { %936 = vst [vmem:[%s1905_s14 + $0x48] sm:$0xff] %v904_v58  ;;  %v785_v29 = vadd.f32 %v1895_v34, %v784_v63  ;;  %v1230_v1 = vpop.f32.mrb[14].mxu1 }
 0x257   : > { %v877_v25 = vmax.f32 %v793_v62, 0.0  ;;  %v796_v2 = vadd.f32 %v1230_v1, %v1895_v34  ;;  %v787_v30 = vpop.f32.mrb[15].mxu1 }
 0x258   : > { %v875_v3 = vmax.f32 %v785_v29, 0.0  ;;  %v788_v26 = vadd.f32 %v1895_v34, %v787_v30 }
 0x259   : > { %v909_v6 = vadd.f32 %v877_v25, %v1784_v35  ;;  %v878_v7 = vmax.f32 %v796_v2, 0.0 }
 0x25a   : > { %v907_v14 = vadd.f32 %v875_v3, %v1774_v31  ;;  %v876_v4 = vmax.f32 %v788_v26, 0.0 }
 0x25b   : > { %941 = vst [vmem:[%s1905_s14 + $0x70] sm:$0xff] %v909_v6  ;;  %v910_v8 = vadd.f32 %v878_v7, %v1787_v36 }
 0x25c   : > { %939 = vst [vmem:[%s1905_s14 + $0x60] sm:$0xff] %v907_v14  ;;  %v908_v9 = vadd.f32 %v876_v4, %v1777_v32  ;;  %v1233_v10 = vpop.f32.mrb[16].mxu1 }
 0x25d   : > { %942 = vst [vmem:[%s1905_s14 + $0x78] sm:$0xff] %v910_v8  ;;  %v809_v11 = vadd.f32 %v1233_v10, %v1895_v34  ;;  %v800_v15 = vpop.f32.mrb[17].mxu1 }
 0x25e   : > { %940 = vst [vmem:[%s1905_s14 + $0x68] sm:$0xff] %v908_v9  ;;  %v801_v35 = vadd.f32 %v1895_v34, %v800_v15  ;;  %v1234_v12 = vpop.f32.mrb[18].mxu1 }
 0x25f   : > { %v881_v31 = vmax.f32 %v809_v11, 0.0  ;;  %v812_v5 = vadd.f32 %v1234_v12, %v1895_v34  ;;  %v803_v36 = vpop.f32.mrb[19].mxu1 }
 0x260   : > { %v879_v13 = vmax.f32 %v801_v35, 0.0  ;;  %v804_v32 = vadd.f32 %v1895_v34, %v803_v36 }
 0x261   : > { %v913_v16 = vadd.f32 %v881_v31, %v1800_v41  ;;  %v882_v19 = vmax.f32 %v812_v5, 0.0 }
 0x262   : > { %v911_v20 = vadd.f32 %v879_v13, %v1790_v37  ;;  %v880_v21 = vmax.f32 %v804_v32, 0.0 }
 0x263   : > { %945 = vst [vmem:[%s1905_s14 + $0x90] sm:$0xff] %v913_v16  ;;  %v914_v24 = vadd.f32 %v882_v19, %v1803_v42 }
 0x264   : > { %943 = vst [vmem:[%s1905_s14 + $0x80] sm:$0xff] %v911_v20  ;;  %v912_v27 = vadd.f32 %v880_v21, %v1793_v38  ;;  %v1237_v28 = vpop.f32.mrb[20].mxu1 }
 0x265   : > { %946 = vst [vmem:[%s1905_s14 + $0x98] sm:$0xff] %v914_v24  ;;  %v825_v33 = vadd.f32 %v1237_v28, %v1895_v34  ;;  %v816_v22 = vpop.f32.mrb[21].mxu1 }
 0x266   : > { %944 = vst [vmem:[%s1905_s14 + $0x88] sm:$0xff] %v912_v27  ;;  %v817_v41 = vadd.f32 %v1895_v34, %v816_v22  ;;  %v1238_v39 = vpop.f32.mrb[22].mxu1 }
 0x267   : > { %v885_v37 = vmax.f32 %v825_v33, 0.0  ;;  %v828_v17 = vadd.f32 %v1238_v39, %v1895_v34  ;;  %v819_v42 = vpop.f32.mrb[23].mxu1 }
 0x268   : > { %v883_v40 = vmax.f32 %v817_v41, 0.0  ;;  %v820_v38 = vadd.f32 %v1895_v34, %v819_v42 }
 0x269   : > { %v917_v23 = vadd.f32 %v885_v37, %v1816_v47  ;;  %v886_v45 = vmax.f32 %v828_v17, 0.0 }
 0x26a   : > { %v915_v18 = vadd.f32 %v883_v40, %v1806_v43  ;;  %v884_v0 = vmax.f32 %v820_v38, 0.0 }
 0x26b   : > { %949 = vst [vmem:[%s1905_s14 + $0xb0] sm:$0xff] %v917_v23  ;;  %v918_v46 = vadd.f32 %v886_v45, %v1819_v48 }
 0x26c   : > { %947 = vst [vmem:[%s1905_s14 + $0xa0] sm:$0xff] %v915_v18  ;;  %v916_v51 = vadd.f32 %v884_v0, %v1809_v44  ;;  %v1241_v52 = vpop.f32.mrb[24].mxu1 }
 0x26d   : > { %950 = vst [vmem:[%s1905_s14 + $0xb8] sm:$0xff] %v918_v46  ;;  %v841_v57 = vadd.f32 %v1241_v52, %v1895_v34  ;;  %v832_v58 = vpop.f32.mrb[25].mxu1 }
 0x26e   : > { %948 = vst [vmem:[%s1905_s14 + $0xa8] sm:$0xff] %v916_v51  ;;  %v833_v47 = vadd.f32 %v1895_v34, %v832_v58  ;;  %v1242_v61 = vpop.f32.mrb[26].mxu1 }
 0x26f   : > { %v889_v43 = vmax.f32 %v841_v57, 0.0  ;;  %v844_v62 = vadd.f32 %v1242_v61, %v1895_v34  ;;  %v835_v48 = vpop.f32.mrb[27].mxu1 }
 0x270   : > { %v887_v63 = vmax.f32 %v833_v47, 0.0  ;;  %v836_v44 = vadd.f32 %v1895_v34, %v835_v48 }
 0x271   : > { %v921_v29 = vadd.f32 %v889_v43, %v1832_v53  ;;  %v890_v1 = vmax.f32 %v844_v62, 0.0 }
 0x272   : > { %v919_v25 = vadd.f32 %v887_v63, %v1822_v49  ;;  %v888_v2 = vmax.f32 %v836_v44, 0.0 }
 0x273   : > { %953 = vst [vmem:[%s1905_s14 + $0xd0] sm:$0xff] %v921_v29  ;;  %v922_v30 = vadd.f32 %v890_v1, %v1835_v54 }
 0x274   : > { %951 = vst [vmem:[%s1905_s14 + $0xc0] sm:$0xff] %v919_v25  ;;  %v920_v3 = vadd.f32 %v888_v2, %v1825_v50  ;;  %v1245_v26 = vpop.f32.mrb[28].mxu1 }
 0x275   : > { %954 = vst [vmem:[%s1905_s14 + $0xd8] sm:$0xff] %v922_v30  ;;  %v857_v6 = vadd.f32 %v1245_v26, %v1895_v34  ;;  %v848_v7 = vpop.f32.mrb[29].mxu1 }
 0x276   : > { %952 = vst [vmem:[%s1905_s14 + $0xc8] sm:$0xff] %v920_v3  ;;  %v849_v53 = vadd.f32 %v1895_v34, %v848_v7  ;;  %v1246_v14 = vpop.f32.mrb[30].mxu1 }
 0x277   : > { %v893_v49 = vmax.f32 %v857_v6, 0.0  ;;  %v860_v4 = vadd.f32 %v1246_v14, %v1895_v34  ;;  %v851_v54 = vpop.f32.mrb[31].mxu1 }
 0x278   : > { %v891_v8 = vmax.f32 %v849_v53, 0.0  ;;  %v852_v50 = vadd.f32 %v1895_v34, %v851_v54 }
 0x279   : > { %v925_v9 = vadd.f32 %v893_v49, %v1848_v59  ;;  %v894_v10 = vmax.f32 %v860_v4, 0.0 }
 0x27a   : > { %v923_v11 = vadd.f32 %v891_v8, %v1838_v55  ;;  %v892_v15 = vmax.f32 %v852_v50, 0.0 }
 0x27b   : > { %957 = vst [vmem:[%s1905_s14 + $0xf0] sm:$0xff] %v925_v9  ;;  %v926_v35 = vadd.f32 %v894_v10, %v1851_v60 }
 0x27c   : > { %955 = vst [vmem:[%s1905_s14 + $0xe0] sm:$0xff] %v923_v11  ;;  %v924_v59 = vadd.f32 %v892_v15, %v1841_v56 }
 0x27d   : > { %958 = vst [vmem:[%s1905_s14 + $0xf8] sm:$0xff] %v926_v35 }
 0x27e   : > { %956 = vst [vmem:[%s1905_s14 + $0xe8] sm:$0xff] %v924_v59 }
 0x27f   : > { %1435 = shalt.err (!%p1432_p2)
}
 0x280   : > { %s1436_s9 = scalar_lea.hbm %s1998_s12, 4096  ;;  %s1440_s11 = scalar_lea.hbm %s2054_s6, 8192 }
 0x281   : > { %p1437_p13 = scmp.ne.s32.totalorder %s1998_s12, %s1436_s9  ;;  %p1441_p4 = scmp.lt.u32.totalorder %s1998_s12, %s2054_s6 }
 0x282   : > { %p1442_p5 = scmp.lt.u32.totalorder %s1440_s11, %s1436_s9  ;;  %p1444_p11 = scmp.lt.u32.totalorder %s1436_s9, %s1998_s12 }
 0x283   : > { %p1438_p6 = pnand %p1437_p13, %p2068_p0 }
 0x284   : > { %p1443_p8 = por %p1442_p5, %p1441_p4 }
 0x285   : > { %p1439_p10 = pneg %p1438_p6 }
 0x286   : > { %p1445_p1 = por %p1444_p11, %p1443_p8 }
 0x288   : > { %p1446_p3 = pnand %p1445_p1, %p1439_p10 }
 0x28a   : > { %1449 = shalt.err (!%p1446_p3)
}
 0x28b   : > { %s1502_s30 = smov 128   ;;  %s1503_s18 = smov 8  }
 0x28c   : > { %1257 = dma.vmem_to_hbm [thread:$0]  (%p2068_p0), %s2000_s8, 4096, %s1998_s12, %s960_s24, %s1502_s30, %s1502_s30, %s1503_s18  }
 0x28d PF: > { %s988_s19 = sand.u32 1, %s1480_s0   ;;  %p2069_p7 = scmp.ne.s32.totalorder %s2059_s27, 0 }
 0x28e   : > { %p2070_p9 = scmp.ge.s32.totalorder %s1492_s23, 2  ;;  %s989_s15 = scalar_lea.sflag [#allocation5], %s988_s19 }
 0x290   : > { %p1271_p12 = pnand %p2070_p9, %p2069_p7 }
 0x292   : > { %1475 = dma.done.wait (!%p1271_p12), %s989_s15, 4096  }
 0x293   : > { %1477 = vsyncadd (!%p1271_p12), %s989_s15, 4294963200  ;;  %p21_p2 = scmp.ge.s32.totalorder %s1649_s17, 4   ;;  %s2071_s0 = smov %s1484_s21 }
 0x294   : > { %s2072_s21 = smov %s1488_s22  ;;  %s2073_s22 = smov %s1665_s29 }
 0x295   : > { %s2074_s23 = smov %s1649_s17  ;;  %23 = sbr.rel (!%p21_p2) target bundleno = 6 (0x6), region = 97 }
 0x29c   :  { %994 = vsyncpa [#allocation4], 1 }
 0x29d   :  { %996 = vsyncpa [#allocation4 + $0x1], 1 }
 0x29e   :  { %997 = vsyncpa [#allocation7], 1 }
 0x29f   :  { %998 = vsyncpa [#allocation5], 1 }
 0x2a0   :  { %1000 = vsyncpa [#allocation5 + $0x1], 1 }

</bundles_post_ra>
